<compile_context>
chip_gen: v6e
topology: v6e:2x2x1
jax: 0.10.0
libtpu: 0.0.40
codegen_flags: <defaults>
</compile_context>

<pallas_src>
import jax
import jax.numpy as jnp
from jax.experimental import pallas as pl
from jax.experimental.pallas import tpu as pltpu


def relu_conv1x1_kernel(x_ref, w_ref, o_ref):
    # x_ref: (Cin, HW)   -- pixels on the lane axis
    # w_ref: (Cout, Cin) -- tiny weight slab, VMEM-resident
    # o_ref: (Cout, HW)  -- lane-dense output store
    x = jnp.maximum(x_ref[...], 0.0)                       # fused ReLU (VPU)
    o_ref[...] = jnp.dot(                                  # MXU matmul
        w_ref[...], x, preferred_element_type=jnp.float32
    ).astype(o_ref.dtype)


def relu_conv1x1(x_nchw, weight_oi):
    """ReLU followed by a 1x1, stride-1, bias-free conv.

    x_nchw:    (N, Cin, H, W)
    weight_oi: (Cout, Cin)   (squeezed from the (Cout, Cin, 1, 1) conv weight)
    returns:   (N, Cout, H, W)
    """
    N, Cin, H, W = x_nchw.shape
    Cout = weight_oi.shape[0]
    HW = H * W

    # Free view of the native NCHW layout: (N, Cin, H*W).
    x_flat = x_nchw.reshape(N, Cin, HW)

    # Advisory hint so XLA schedules this small, memory-bound call sensibly.
    cost = pl.CostEstimate(
        flops=2 * N * HW * Cin * Cout,
        transcendentals=0,
        bytes_accessed=(N * HW * Cin + N * HW * Cout + Cin * Cout) * 4,
    )

    out_flat = pl.pallas_call(
        relu_conv1x1_kernel,
        out_shape=jax.ShapeDtypeStruct((N, Cout, HW), x_nchw.dtype),
        grid_spec=pltpu.PrefetchScalarGridSpec(
            num_scalar_prefetch=0,
            # One grid step per batch image; the full (Cin, HW) / (Cout, HW)
            # slabs easily fit VMEM at the module's shapes.
            grid=(N,),
            in_specs=[
                pl.BlockSpec((None, Cin, HW), lambda b: (b, 0, 0)),
                pl.BlockSpec((Cout, Cin), lambda b: (0, 0)),
            ],
            out_specs=pl.BlockSpec((None, Cout, HW), lambda b: (b, 0, 0)),
        ),
        compiler_params=pltpu.CompilerParams(
            dimension_semantics=("parallel",),
        ),
        cost_estimate=cost,
    )(x_flat, weight_oi)

    # (N, Cout, H*W) -> (N, Cout, H, W) is also a free view.
    return out_flat.reshape(N, Cout, H, W)


if __name__ == "__main__":
    key = jax.random.PRNGKey(0)
    kx, kw = jax.random.split(key)

    # Channels are fixed by the module's conv (72 -> 24, 1x1, no bias);
    # use a small spatial extent (and batch=2 to exercise the grid).
    N, Cin, H, W = 2, 72, 16, 16
    Cout = 24

    x = jax.random.normal(kx, (N, Cin, H, W), dtype=jnp.float32)
    # Deterministic Kaiming-ish init for the 1x1 conv weight (Cout, Cin).
    weight = jax.random.normal(kw, (Cout, Cin), dtype=jnp.float32) * (
        1.0 / jnp.sqrt(Cin)
    )

    out = relu_conv1x1(x, weight)
    jax.block_until_ready(out)

    # Reference check in plain JAX (same math: relu then 1x1 conv, no bias).
    ref = jnp.einsum("nchw,oc->nohw", jnp.maximum(x, 0.0), weight)
    assert out.shape == (N, Cout, H, W), out.shape
    assert jnp.allclose(out, ref, atol=1e-4, rtol=1e-4)

    print("KERNEL_OK")
</pallas_src>

<mosaic_0001>
module attributes {stable_mosaic.version = 11 : i64} {
  func.func @relu_conv1x1_kernel(%arg0: i32, %arg1: memref<1x72x256xf32, #tpu.memory_space<vmem>>, %arg2: memref<24x72xf32, #tpu.memory_space<vmem>>, %arg3: memref<1x24x256xf32, #tpu.memory_space<vmem>>) attributes {dimension_semantics = [#tpu.dimension_semantics<parallel>], iteration_bounds = array<i64: 2>, scalar_prefetch = 0 : i64, scratch_operands = 0 : i64, tpu.core_type = #tpu.core_type<tc>, window_params = [{transform_indices = @transform_0, window_bounds = array<i64: 1, 72, 256>}, {pipeline_mode = #tpu.pipeline_mode<synchronous>, transform_indices = @transform_1, window_bounds = array<i64: 24, 72>}, {transform_indices = @transform_2, window_bounds = array<i64: 1, 24, 256>}]} {
    %c0 = arith.constant 0 : index
    %c0_0 = arith.constant 0 : index
    %c0_1 = arith.constant 0 : index
    %0 = vector.load %arg1[%c0, %c0_0, %c0_1] : memref<1x72x256xf32, #tpu.memory_space<vmem>>, vector<1x72x256xf32>
    %1 = vector.shape_cast %0 : vector<1x72x256xf32> to vector<72x256xf32>
    %cst = arith.constant 0.000000e+00 : f32
    %2 = vector.broadcast %cst : f32 to vector<72x256xf32>
    %3 = arith.maximumf %1, %2 : vector<72x256xf32>
    %c0_2 = arith.constant 0 : index
    %c0_3 = arith.constant 0 : index
    %4 = vector.load %arg2[%c0_2, %c0_3] : memref<24x72xf32, #tpu.memory_space<vmem>>, vector<24x72xf32>
    %cst_4 = arith.constant dense<0.000000e+00> : vector<24x256xf32>
    %5 = tpu.matmul %4, %3, %cst_4 {dimension_numbers = #tpu.dot_dimension_numbers<[1], [0], [0], [1], [0, 0, 1, 1], [], []>} : vector<24x72xf32>, vector<72x256xf32>, vector<24x256xf32> -> vector<24x256xf32>
    %c0_5 = arith.constant 0 : index
    %c0_6 = arith.constant 0 : index
    %c0_7 = arith.constant 0 : index
    %6 = vector.load %arg3[%c0_5, %c0_6, %c0_7] : memref<1x24x256xf32, #tpu.memory_space<vmem>>, vector<1x24x256xf32>
    %7 = vector.shape_cast %6 : vector<1x24x256xf32> to vector<24x256xf32>
    %8 = vector.shape_cast %5 : vector<24x256xf32> to vector<1x24x256xf32>
    tpu.vector_store %arg3[%c0_5, %c0_6, %c0_7], %8 {strides = array<i32>} : memref<1x24x256xf32, #tpu.memory_space<vmem>>, vector<1x24x256xf32>,
    return
  }
  func.func @transform_0(%arg0: i32) -> (i32, i32, i32) {
    %c0_i32 = arith.constant 0 : i32
    %c0_i32_0 = arith.constant 0 : i32
    %c0_i32_1 = arith.constant 0 : i32
    return %arg0, %c0_i32, %c0_i32_0 : i32, i32, i32
  }
  func.func @transform_1(%arg0: i32) -> (i32, i32) {
    %c0_i32 = arith.constant 0 : i32
    %c0_i32_0 = arith.constant 0 : i32
    %c0_i32_1 = arith.constant 0 : i32
    return %c0_i32, %c0_i32_0 : i32, i32
  }
  func.func @transform_2(%arg0: i32) -> (i32, i32, i32) {
    %c0_i32 = arith.constant 0 : i32
    %c0_i32_0 = arith.constant 0 : i32
    %c0_i32_1 = arith.constant 0 : i32
    return %arg0, %c0_i32, %c0_i32_0 : i32, i32, i32
  }
}

</mosaic_0001>

<bundles_post_ra>
// kernel: tpu_custom_call.1
= control target key start
LH: loop header
LB: loop body
LE: loop exit
PB: predicated region body
PF: predicated region fallthrough
CT: control target
= control target key end

     0   :  { %7 = vsyncpa [#allocation3], 0  ;;  %s862_s0 = inlined_call_operand.hbm [shape: f32[2,72,256], index: 0, kind: input, shape index: {}]   ;;  %s863_s1 = inlined_call_operand.hbm [shape: f32[24,72], index: 1, kind: input, shape index: {}]   ;;  %s864_s2 = inlined_call_operand.hbm [shape: f32[2,24,256], index: 2, kind: output, shape index: {}]  }
   0x1   :  { %9 = vsyncpa [#allocation3 + $0x1], 0 }
   0x2   :  { %10 = vsyncpa [#allocation6], 0 }
   0x3   :  { %11 = vsyncpa [#allocation4], 0 }
   0x4   :  { %13 = vsyncpa [#allocation4 + $0x1], 0  ;;  %s661_s9 = smov 0   ;;  %s663_s10 = smov 0  }
   0x5   :  { %s665_s11 = smov 0   ;;  %s667_s12 = smov 0  }
   0x6 LB: > { %s682_s13 = sadd.s32 4294967295, %s634_s12   ;;  %s412_s14 = sadd.s32 4294967294, %s634_s12   ;;  %s634_s12 = sphi %s667_s12, %s886_s12   ;;  %s630_s11 = sphi %s665_s11, %s885_s11   ;;  %s626_s10 = sphi %s663_s10, %s884_s10   ;;  %s622_s9 = sphi %s661_s9, %s883_s9  }
   0x7   : > { %p39_p0 = scmp.ne.s32.totalorder %s626_s10, %s622_s9  ;;  %p865_p1 = scmp.eq.s32.totalorder %s682_s13, 0 }
   0x8   : > { %p90_p3 = scmp.eq.s32.totalorder %s412_s14, 1  ;;  %p413_p5 = scmp.ge.s32.totalorder %s634_s12, 1 }
   0x9   : > { %p691_p4 = por %p865_p1, %p39_p0  ;;  %p97_p7 = scmp.lt.s32.totalorder %s634_s12, 3 }
   0xa   : > { %p696_p6 = por %p90_p3, %p39_p0  ;;  %s636_s18 = smov [#allocation5]  }
   0xb   : > { %s869_s15 = scalar_select %p691_p4, 1, 0 }
   0xc   : > { %s870_s16 = scalar_select %p696_p6, 1, 0 }
   0xd   : > { %p701_p8 = pnand %p413_p5, %p97_p7  ;;  %s109_s19 = sshll.u32 %s636_s18, 4  ;;  %s110_s19 = int_to_ptr.vmem [resolvable:$true] %s109_s19 }
   0xe   : > { %s715_s21 = sadd.s32 1, %s634_s12   ;;  %s26_s22 = sadd.s32 1, %s630_s11 }
   0xf   : > { %s871_s17 = scalar_select %p701_p8, 1, 0 }
  0x10   : > { %p456_p9 = pneg %p701_p8  ;;  %s23_s23 = ssub.s32 %s634_s12, %s715_s21 }
  0x11   : > { %s523_s24 = scalar_lea.vmem %s110_s19, 384  ;;  %p531_p5 = scmp.lt.s32.totalorder %s110_s19, %s110_s19 }
  0x12   : > { %p710_p11 = pnand %p456_p9, %p865_p1  ;;  %p524_p13 = scmp.ne.s32.totalorder %s110_s19, %s523_s24 }
  0x13   : > { %p532_p7 = scmp.lt.s32.totalorder %s523_s24, %s523_s24 }
  0x14   : > { %p514_p12 = pneg %p710_p11 }
  0x15   : > { %p533_p10 = por %p532_p7, %p531_p5 }
  0x16   : > { %p526_p0 = pnand %p524_p13, %p514_p12 }
  0x18   : > { %p527_p3 = pneg %p526_p0 }
  0x1a   : > { %p534_p2 = pnand %p533_p10, %p527_p3 }
  0x1c   : > { %537 = shalt.err (!%p534_p2)
}
  0x1d   : > { %s637_s25 = smov 128   ;;  %s638_s26 = smov 8  }
  0x1e   : > { %459 = dma.hbm_to_vmem [thread:$0]  (!%p710_p11), %s863_s1, 384, %s110_s19, [#allocation6], %s637_s25, %s637_s25, %s638_s26  }
  0x1f   : > { %p24_p9 = scmp.eq.s32.totalorder %s23_s23, 0  ;;  %p33_p12 = scmp.ne.s32.totalorder %s630_s11, %s626_s10 }
  0x20   : > { %p34_p10 = scmp.eq.s32.totalorder %s634_s12, 0  ;;  %p469_p2 = scmp.lt.s32.totalorder %s634_s12, 2 }
  0x21   : > { %s732_s29 = scalar_select %p24_p9, %s630_s11, %s26_s22  }
  0x22   : > { %p35_p13 = por %p34_p10, %p33_p12  ;;  %p873_p0 = scmp.eq.s32.totalorder %s682_s13, 1 }
  0x23   : > { %s123_s3 = sand.u32 1, %s630_s11   ;;  %s444_s4 = smul.u32 2304, %s634_s12 }
  0x24   : > { %p736_p3 = por %p873_p0, %p33_p12  ;;  %s443_s5 = smul.u32 144, %s123_s3 }
  0x25   : > { %s745_s8 = scalar_lea.hbm %s862_s0, %s444_s4  ;;  %p747_p11 = pnand %p469_p2, %p35_p13 }
  0x26   : > { %s874_s30 = scalar_select %p736_p3, 1, 0 }
  0x27   : > { %s127_s18 = scalar_lea.vmem [#allocation2], %s443_s5  ;;  %s753_s20 = scalar_lea.sflag [#allocation3], %s123_s3 }
  0x28   : > { %s134_s19 = sshll.u32 %s127_s18, 4  ;;  %s538_s22 = scalar_lea.hbm %s745_s8, 2304  ;;  %s751_s19 = int_to_ptr.vmem [resolvable:$true] %s134_s19 }
  0x29   : > { %p539_p5 = scmp.ne.s32.totalorder %s745_s8, %s538_s22  ;;  %p540_p7 = pneg %p747_p11 }
  0x2a   : > { %s543_s25 = scalar_lea.hbm %s862_s0, 4608  ;;  %p544_p10 = scmp.lt.s32.totalorder %s745_s8, %s862_s0 }
  0x2b   : > { %p541_p9 = pnand %p540_p7, %p539_p5  ;;  %p545_p2 = scmp.lt.s32.totalorder %s543_s25, %s538_s22 }
  0x2d   : > { %p542_p12 = pneg %p541_p9  ;;  %p546_p13 = por %p545_p2, %p544_p10 }
  0x2f   : > { %p547_p0 = pnand %p546_p13, %p542_p12 }
  0x31   : > { %550 = shalt.err (!%p547_p0)
}
  0x32   : > { %s551_s28 = scalar_lea.vmem %s751_s19, 2304  ;;  %s639_s3 = smov [#allocation2]  }
  0x33   : > { %p552_p1 = scmp.ne.s32.totalorder %s751_s19, %s551_s28  ;;  %s556_s4 = sshll.u32 %s639_s3, 4  ;;  %s557_s4 = int_to_ptr.vmem [resolvable:$false] %s556_s4 }
  0x34   : > { %s558_s5 = scalar_lea.vmem %s557_s4, 4608  ;;  %p559_p9 = scmp.lt.s32.totalorder %s751_s19, %s557_s4 }
  0x35   : > { %p554_p6 = pnand %p552_p1, %p540_p7  ;;  %p560_p3 = scmp.lt.s32.totalorder %s558_s5, %s551_s28 }
  0x37   : > { %p555_p5 = pneg %p554_p6  ;;  %p561_p4 = por %p560_p3, %p559_p9 }
  0x39   : > { %p562_p8 = pnand %p561_p4, %p555_p5 }
  0x3b   : > { %565 = shalt.err (!%p562_p8)
}
  0x3c   : > { %s640_s6 = smov 256   ;;  %s641_s7 = smov 16  }
  0x3d   : > { %463 = dma.hbm_to_vmem [thread:$0]  (!%p747_p11), %s745_s8, 2304, %s751_s19, %s753_s20, %s640_s6, %s640_s6, %s641_s7  }
  0x3e   : > { %p876_p1 = scmp.ne.s32.totalorder %s871_s17, 0 }
  0x3f   : > { %s777_s18 = sand.u32 (!%p876_p1), 1, %s626_s10   ;;  %p877_p4 = scmp.ne.s32.totalorder (!%p876_p1), %s869_s15, 0 }
  0x40   : > { %146 = sbr.rel (%p876_p1) target bundleno = 307 (0x133), region = 28  ;;  %s149_s23 = scalar_lea.sflag (!%p876_p1), [#allocation3], %s777_s18 }
  0x41   : > { %s445_s22 = smul.u32 (!%p876_p1), 144, %s777_s18 }
  0x43   : > { %s781_s24 = scalar_lea.vmem (!%p876_p1), [#allocation2], %s445_s22 }
  0x45   : > { %609 = dma.done.wait (%p877_p4), %s149_s23, 2304  }
  0x46   : > { %611 = vsyncadd (%p877_p4), %s149_s23, 4294964992  ;;  %p878_p6 = scmp.eq.s32.totalorder %s682_s13, 0 }
  0x48   : > { %613 = dma.done.wait (%p878_p6), [#allocation6], 384   ;;  %p879_p8 = pmov %p878_p6 }
  0x49   : > { %v642_v0 = vmov 0.0   ;;  %v194_v1 = vld [vmem:[%s781_s24 + $0x88] sm:$0xff]  ;;  %v193_v2 = vld [vmem:[%s781_s24 + $0x80] sm:$0xff]  ;;  %v192_v3 = vld [vmem:[%s781_s24 + $0x78] sm:$0xff]  ;;  %vm216_vm0 = vcmask 588800   ;;  %s446_s15 = smul.u32 48, %s777_s18 }
  0x4a   : > { %615 = vsyncadd (%p879_p8), [#allocation6], 4294966912  ;;  %296 = vmatprep.mubr.f32.mxu1 %v642_v0  ;;  %290 = vmatprep.mubr.f32.mxu0 %v642_v0  ;;  %v212_v4 = vmax.f32 %v194_v1, 0.0  ;;  %v211_v5 = vmax.f32 %v193_v2, 0.0  ;;  %v210_v6 = vmax.f32 %v192_v3, 0.0  ;;  %v191_v7 = vld [vmem:[%s781_s24 + $0x70] sm:$0xff] }
  0x4b   : > { %v190_v8 = vld [vmem:[%s781_s24 + $0x68] sm:$0xff]  ;;  %v189_v9 = vld [vmem:[%s781_s24 + $0x60] sm:$0xff]  ;;  %v209_v10 = vmax.f32 %v191_v7, 0.0  ;;  %v188_v11 = vld [vmem:[%s781_s24 + $0x58] sm:$0xff]  ;;  %s176_s17 = scalar_lea.vmem [#allocation7], %s446_s15  ;;  %s447_s14 = smul.u32 768, %s682_s13 }
  0x4c   : > { %425 = vmatprep.subr.mxu1 %v212_v4  ;;  %240 = vmatprep.subr.mxu0 %v212_v4  ;;  %v208_v12 = vmax.f32 %v190_v8, 0.0  ;;  %v187_v13 = vld [vmem:[%s781_s24 + $0x50] sm:$0xff]  ;;  %v207_v14 = vmax.f32 %v189_v9, 0.0  ;;  %v186_v15 = vld [vmem:[%s781_s24 + $0x48] sm:$0xff]  ;;  %v206_v16 = vmax.f32 %v188_v11, 0.0  ;;  %v185_v17 = vld [vmem:[%s781_s24 + $0x40] sm:$0xff] }
  0x4d   : > { %434 = vmatpush1.msra.mxu1 %v211_v5  ;;  %241 = vmatpush1.msra.mxu0 %v211_v5  ;;  %v205_v18 = vmax.f32 %v187_v13, 0.0  ;;  %v184_v19 = vld [vmem:[%s781_s24 + $0x38] sm:$0xff]  ;;  %v204_v20 = vmax.f32 %v186_v15, 0.0  ;;  %v183_v21 = vld [vmem:[%s781_s24 + $0x30] sm:$0xff]  ;;  %v203_v22 = vmax.f32 %v185_v17, 0.0  ;;  %v182_v23 = vld [vmem:[%s781_s24 + $0x28] sm:$0xff]  ;;  %s819_s25 = scalar_lea.hbm %s864_s2, %s447_s14 }
  0x4e   : > { %426 = vmatprep.subr.mxu1 %v210_v6  ;;  %242 = vmatprep.subr.mxu0 %v210_v6  ;;  %v202_v24 = vmax.f32 %v184_v19, 0.0  ;;  %v181_v25 = vld [vmem:[%s781_s24 + $0x20] sm:$0xff]  ;;  %v201_v26 = vmax.f32 %v183_v21, 0.0  ;;  %v180_v27 = vld [vmem:[%s781_s24 + $0x18] sm:$0xff]  ;;  %v200_v28 = vmax.f32 %v182_v23, 0.0  ;;  %v179_v29 = vld [vmem:[%s781_s24 + $0x10] sm:$0xff] }
  0x4f   : > { %435 = vmatpush1.msra.mxu1 %v209_v10  ;;  %243 = vmatpush1.msra.mxu0 %v209_v10  ;;  %v199_v30 = vmax.f32 %v181_v25, 0.0  ;;  %v178_v31 = vld [vmem:[%s781_s24 + $0x8] sm:$0xff]  ;;  %v198_v32 = vmax.f32 %v180_v27, 0.0  ;;  %v177_v33 = vld [vmem:[%s781_s24] sm:$0xff]  ;;  %v197_v34 = vmax.f32 %v179_v29, 0.0  ;;  %s329_s8 = sshll.u32 %s176_s17, 4  ;;  %s814_s8 = int_to_ptr.vmem [resolvable:$true] %s329_s8 }
  0x50   : > { %427 = vmatprep.subr.mxu1 %v208_v12  ;;  %244 = vmatprep.subr.mxu0 %v208_v12  ;;  %v196_v35 = vmax.f32 %v178_v31, 0.0  ;;  %v195_v36 = vmax.f32 %v177_v33, 0.0  ;;  %v214_v37 = vld [vmem:[#allocation5 + $0x8] sm:$0xff]  ;;  %v213_v38 = vld [vmem:[#allocation5] sm:$0xff]  ;;  %v215_v39 = vld [vmem:[#allocation5 + $0x10] sm:$0xff]  ;;  %s316_s13 = scalar_lea.sflag [#allocation4], %s777_s18 }
  0x51   : > { %436 = vmatpush1.msra.mxu1 %v207_v14  ;;  %245 = vmatpush1.msra.mxu0 %v207_v14  ;;  %s566_s26 = scalar_lea.vmem %s814_s8, 768  ;;  %p880_p11 = scmp.ne.s32.totalorder %s874_s30, 0 }
  0x52   : > { %428 = vmatprep.subr.mxu1 %v206_v16  ;;  %246 = vmatprep.subr.mxu0 %v206_v16  ;;  %p567_p3 = scmp.ne.s32.totalorder %s814_s8, %s566_s26  ;;  %s643_s27 = smov [#allocation7]  }
  0x53   : > { %437 = vmatpush1.msra.mxu1 %v205_v18  ;;  %247 = vmatpush1.msra.mxu0 %v205_v18  ;;  %s570_s28 = sshll.u32 %s643_s27, 4  ;;  %s571_s28 = int_to_ptr.vmem [resolvable:$false] %s570_s28 }
  0x54   : > { %429 = vmatprep.subr.mxu1 %v204_v20  ;;  %248 = vmatprep.subr.mxu0 %v204_v20  ;;  %p568_p7 = pnand %p567_p3, %p880_p11  ;;  %s572_s3 = scalar_lea.vmem %s571_s28, 1536 }
  0x55   : > { %438 = vmatpush1.msra.mxu1 %v203_v22  ;;  %249 = vmatpush1.msra.mxu0 %v203_v22  ;;  %p573_p10 = scmp.lt.s32.totalorder %s814_s8, %s571_s28  ;;  %p574_p2 = scmp.lt.s32.totalorder %s572_s3, %s566_s26 }
  0x56   : > { %430 = vmatprep.subr.mxu1 %v202_v24  ;;  %250 = vmatprep.subr.mxu0 %v202_v24  ;;  %p569_p12 = pneg %p568_p7 }
  0x57   : > { %439 = vmatpush1.msra.mxu1 %v201_v26  ;;  %251 = vmatpush1.msra.mxu0 %v201_v26  ;;  %p575_p13 = por %p574_p2, %p573_p10 }
  0x58   : > { %431 = vmatprep.subr.mxu1 %v200_v28  ;;  %252 = vmatprep.subr.mxu0 %v200_v28 }
  0x59   : > { %440 = vmatpush1.msra.mxu1 %v199_v30  ;;  %253 = vmatpush1.msra.mxu0 %v199_v30  ;;  %p576_p0 = pnand %p575_p13, %p569_p12 }
  0x5a   : > { %432 = vmatprep.subr.mxu1 %v198_v32  ;;  %254 = vmatprep.subr.mxu0 %v198_v32 }
  0x5b   : > { %441 = vmatpush1.msra.mxu1 %v197_v34  ;;  %255 = vmatpush1.msra.mxu0 %v197_v34 }
  0x5c   : > { %433 = vmatprep.subr.mxu1 %v196_v35  ;;  %256 = vmatprep.subr.mxu0 %v196_v35 }
  0x5d   : > { %442 = vmatpush1.msra.mxu1 %v195_v36  ;;  %257 = vmatpush1.msra.mxu0 %v195_v36 }
  0x5e   : > { %420 = vmatmul.mubr.msk.f32.vlgmr.msra.gmra.mxu1 %vm216_vm0, %v214_v37  ;;  %419 = vmatmul.mubr.msk.f32.vlgmr.msra.gmra.mxu0 %vm216_vm0, %v213_v38 }
  0x5f   : > { %302 = vmatprep.mubr.f32.mxu1 %v642_v0 }
  0x62   : > { %421 = vmatmul.mubr.msk.f32.gmra.mxu1 %vm216_vm0, %v215_v39 }
 0x11e   : > { %v298_v40 = vpop.f32.mrf.mxu1  ;;  %v292_v41 = vpop.f32.mrf.mxu0 }
 0x11f   : > { %311 = vst [vmem:[%s176_s17 + $0x10] sm:$0xff] %v298_v40  ;;  %309 = vst [vmem:[%s176_s17] sm:$0xff] %v292_v41 }
 0x120   : > { %v300_v42 = vpop.f32.mrf.mxu1  ;;  %v294_v43 = vpop.f32.mrf.mxu0 }
 0x121   : > { %312 = vst [vmem:[%s176_s17 + $0x18] sm:$0xff] %v300_v42  ;;  %310 = vst [vmem:[%s176_s17 + $0x8] sm:$0xff] %v294_v43 }
 0x122   : > { %v304_v44 = vpop.f32.mrf.mxu1 }
 0x123   : > { %313 = vst [vmem:[%s176_s17 + $0x20] sm:$0xff] %v304_v44 }
 0x124   : > { %v306_v45 = vpop.f32.mrf.mxu1 }
 0x125   : > { %314 = vst [vmem:[%s176_s17 + $0x28] sm:$0xff] %v306_v45 }
 0x126   : > { %579 = shalt.err (!%p576_p0)
}
 0x127   : > { %s580_s4 = scalar_lea.hbm %s819_s25, 768  ;;  %s584_s7 = scalar_lea.hbm %s864_s2, 1536 }
 0x128   : > { %p581_p5 = scmp.ne.s32.totalorder %s819_s25, %s580_s4  ;;  %p585_p4 = scmp.lt.s32.totalorder %s819_s25, %s864_s2 }
 0x129   : > { %p586_p6 = scmp.lt.s32.totalorder %s584_s7, %s580_s4 }
 0x12a   : > { %p582_p9 = pnand %p581_p5, %p880_p11 }
 0x12b   : > { %p587_p8 = por %p586_p6, %p585_p4 }
 0x12c   : > { %p583_p1 = pneg %p582_p9 }
 0x12e   : > { %p588_p3 = pnand %p587_p8, %p583_p1 }
 0x130   : > { %591 = shalt.err (!%p588_p3)
}
 0x131   : > { %s644_s24 = smov 256   ;;  %s645_s15 = smov 16  }
 0x132   : > { %454 = dma.vmem_to_hbm [thread:$0]  (%p880_p11), %s814_s8, 768, %s819_s25, %s316_s13, %s644_s24, %s644_s24, %s645_s15  }
 0x133 PF: > { %s344_s17 = sand.u32 1, %s622_s9   ;;  %p881_p7 = scmp.ne.s32.totalorder %s870_s16, 0 }
 0x134   : > { %p882_p12 = scmp.ge.s32.totalorder %s634_s12, 2  ;;  %s345_s14 = scalar_lea.sflag [#allocation4], %s344_s17 }
 0x136   : > { %p465_p10 = pnand %p882_p12, %p881_p7 }
 0x138   : > { %p466_p2 = pneg %p465_p10 }
 0x13a   : > { %617 = dma.done.wait (%p466_p2), %s345_s14, 768  }
 0x13b   : > { %619 = vsyncadd (%p466_p2), %s345_s14, 4294966528  ;;  %p16_p13 = scmp.ge.s32.totalorder %s715_s21, 4   ;;  %s883_s9 = smov %s626_s10 }
 0x13c   : > { %s884_s10 = smov %s630_s11  ;;  %s885_s11 = smov %s732_s29 }
 0x13d   : > { %s886_s12 = smov %s715_s21  ;;  %18 = sbr.rel (!%p16_p13) target bundleno = 6 (0x6), region = 77 }
 0x142   :  { %350 = vsyncpa [#allocation3], 1 }
 0x143   :  { %352 = vsyncpa [#allocation3 + $0x1], 1 }
 0x144   :  { %353 = vsyncpa [#allocation6], 1 }
 0x145   :  { %354 = vsyncpa [#allocation4], 1 }
 0x146   :  { %356 = vsyncpa [#allocation4 + $0x1], 1 }

</bundles_post_ra>
